<compile_context>
chip_gen: v7x
topology: tpu7x:2x2x1
jax: 0.10.0
libtpu: 0.0.40
codegen_flags: <defaults>
</compile_context>

<pallas_src>
import functools

import jax
import jax.numpy as jnp
from jax.experimental import pallas as pl
from jax.experimental.pallas import tpu as pltpu


def _tpu_vmem_bytes():
    """Physical per-core VMEM capacity (falls back to 128 MiB)."""
    try:
        info = pltpu.get_tpu_info()
        cap = getattr(info, "vmem_capacity_bytes", None)
        if cap:
            return int(cap)
    except Exception:
        pass
    return 128 * 1024 * 1024


def _tensorcore_count():
    """Best-effort TensorCores per device (v7x = 2, v5e/v6e = 1)."""
    try:
        dev = jax.devices()[0]
        kind = str(getattr(dev, "device_kind", "")).lower()
        if "v7" in kind or "7x" in kind:
            return 2
        n = getattr(dev, "num_cores", None)
        if n:
            return int(n)
    except Exception:
        pass
    return 1


def _moe_kernel(coeffs_ref, w_ref, o_ref, *, height, width, hw):
    """Hot path: fused quadratic eval (VPU), one contiguous exp (EUP),
    K-reduction (FMAs), approx-reciprocal normalize.

    coeffs_ref : (K, TN, 8)  per-(k, n) polynomial coefficients
                 [c1, ca, cb, caa, cbb, cab, 0, 0]
    w_ref      : (K, TN, 1)  pre-splat softmax weights
    o_ref      : (TN, TP)    lane-dense output block
    """
    tn, tp = o_ref.shape
    nk = coeffs_ref.shape[0]

    # ---- pixel coords for this lane tile, generated in-kernel (no HBM streams) ----
    # Flattened pixel index p = ix * height + iy (torch meshgrid 'ij' order).
    start = pl.program_id(1) * tp
    lane = jax.lax.broadcasted_iota(jnp.int32, (1, tp), 1)
    p = jnp.minimum(lane + start, hw - 1)        # clamp padded lanes -> finite exp
    # Exact int32 remainder + 2-step fixup of the f32 quotient estimate
    # (|estimate error| <= 2 holds far past 10^7 pixels).
    ix = jnp.floor(p.astype(jnp.float32) * jnp.float32(1.0 / height)).astype(jnp.int32)
    iy = p - ix * height
    for _ in range(2):
        ix = jnp.where(iy >= height, ix + 1, jnp.where(iy < 0, ix - 1, ix))
        iy = p - ix * height
    a = ix.astype(jnp.float32) * jnp.float32(1.0 / max(width - 1, 1))    # grid_x
    b = iy.astype(jnp.float32) * jnp.float32(1.0 / max(height - 1, 1))   # grid_y

    # ---- register-resident polynomial basis (no VMEM scratch round trip) ----
    aa = a * a
    bb = b * b
    ab = a * b

    # ---- fused quadratic over the whole (K*TN, TP) block: 5 VPU FMAs, exact f32 ----
    cf = coeffs_ref[...].reshape(nk * tn, 8)     # free leading-dim merge (TN % 8 == 0)
    z = (cf[:, 0:1]
         + cf[:, 1:2] * a
         + cf[:, 2:3] * b
         + cf[:, 3:4] * aa
         + cf[:, 4:5] * bb
         + cf[:, 5:6] * ab)
    # NOTE: no max-subtraction before the exp, matching the original module.
    e = jnp.exp(z)                               # one contiguous EUP block

    # ---- K reduction: pure adds/FMAs with pre-splat (TN, 1) weights ----
    g = e[0:tn]
    num = e[0:tn] * w_ref[0]
    for k in range(1, nk):
        ek = e[k * tn:(k + 1) * tn]              # sublane-aligned static slice
        g = g + ek
        num = num + ek * w_ref[k]

    inv_g = pl.reciprocal(jnp.maximum(g, 1e-8), approx=True)   # EUP, not VALU divide
    o_ref[...] = jnp.clip(num * inv_g, 0.0, 1.0).astype(o_ref.dtype)


def moe_forward(height, width, params, *, in_channels=3, kernel=4,
                out_dtype=jnp.float32):
    """JAX/Pallas equivalent of MoE.forward(height, width, params)."""
    params = params.astype(jnp.float32)
    B, M, _ = params.shape
    K = kernel
    N = B * M
    HW = height * width

    # ---- tiny (N, K) parameter math: stays in plain JAX ----
    mu_x = params[:, :, :K].reshape(N, K)
    mu_y = params[:, :, K:2 * K].reshape(N, K)
    raw_w = params[:, :, 2 * K:3 * K].reshape(N, K)
    raw_S = params[:, :, 3 * K:3 * K + 4 * K].reshape(N, K, 2, 2)
    L = jnp.tril(raw_S)
    Sigma = L @ jnp.swapaxes(L, -2, -1)
    srow = jnp.sum(Sigma, axis=-1)               # row sums (degenerate einsum)
    sxh = -0.5 * srow[..., 0]                    # fold the -0.5 into the scalars
    syh = -0.5 * srow[..., 1]
    w = jax.nn.softmax(raw_w, axis=1)            # (N, K), hoisted out of the kernel

    # Expand z = (dx*sxh + dy*syh)*(dx+dy) as a polynomial in (a, b).
    q1 = mu_x * sxh + mu_y * syh
    q2 = mu_x + mu_y
    c1 = q1 * q2
    ca = -sxh * q2 - q1
    cb = -syh * q2 - q1
    caa = sxh
    cbb = syh
    cab = sxh + syh
    zero = jnp.zeros_like(c1)
    coeffs = jnp.stack([c1, ca, cb, caa, cbb, cab, zero, zero], axis=-1)   # (N,K,8)
    coeffs = jnp.transpose(coeffs, (1, 0, 2))                              # (K,N,8)
    w_col = jnp.transpose(w, (1, 0))[:, :, None]                           # (K,N,1)

    # ---- generation-aware tiling (review items 5/6/7) ----
    LANE = 128
    vmem_phys = _tpu_vmem_bytes()
    if vmem_phys <= 64 * 1024 * 1024:            # v7x-class core: 64 MiB VMEM
        budget, tp_cap, vmem_limit = 40 << 20, 2048, 48 << 20
    else:                                        # v5e / v6e: 128 MiB VMEM
        budget, tp_cap, vmem_limit = 72 << 20, 4096, 96 << 20

    TP = min(tp_cap, pl.cdiv(HW, LANE) * LANE)   # lane-dense, 128-aligned tile
    hw_blocks = pl.cdiv(HW, TP)
    HW_pad = hw_blocks * TP

    # f32 working set per (row, lane): double-buffered out + z/e (K rows each)
    # + accumulators / live temps.
    bytes_per_cell = 4 * (2 + 2 * K + 4)
    tn_cap = max(8, (budget // (TP * bytes_per_cell)) // 8 * 8)

    N_pad = pl.cdiv(N, 8) * 8
    TN = min(N_pad, tn_cap)
    n_cores = _tensorcore_count()
    if n_cores >= 2 and hw_blocks < n_cores and N_pad >= 16:
        # v7x megacore: split the row axis (keeps full-width lane-dense stores);
        # single-core parts never take artificial extra grid steps.
        TN = min(TN, max(8, pl.cdiv(pl.cdiv(N_pad, n_cores), 8) * 8))

    n_blocks = pl.cdiv(N_pad, TN)
    N_tot = n_blocks * TN
    if N_tot != N:                               # padded rows -> zeros, sliced off
        coeffs = jnp.pad(coeffs, ((0, 0), (0, N_tot - N), (0, 0)))
        w_col = jnp.pad(w_col, ((0, 0), (0, N_tot - N), (0, 0)))

    kern = functools.partial(_moe_kernel, height=height, width=width, hw=HW)
    y = pl.pallas_call(
        kern,
        out_shape=jax.ShapeDtypeStruct((N_tot, HW_pad), out_dtype),
        grid=(n_blocks, hw_blocks),
        in_specs=[
            pl.BlockSpec((K, TN, 8), lambda i, j: (0, i, 0)),   # coeffs, N-tiled
            pl.BlockSpec((K, TN, 1), lambda i, j: (0, i, 0)),   # pre-splat weights
        ],
        out_specs=pl.BlockSpec((TN, TP), lambda i, j: (i, j)),
        compiler_params=pltpu.CompilerParams(
            dimension_semantics=("parallel", "parallel"),
            vmem_limit_bytes=vmem_limit),
    )(coeffs, w_col)

    # drop padding, then match y_hat.view(-1, ch, height, width)
    y = y[:N, :HW]
    return y.reshape(-1, in_channels, height, width)


def moe_reference(height, width, params, *, in_channels=3, kernel=4):
    """Pure-JAX reference reproducing the exact torch einsum semantics."""
    params = params.astype(jnp.float32)
    B, M, _ = params.shape
    K = kernel
    N = B * M

    mu_x = params[:, :, :K].reshape(N, K, 1)
    mu_y = params[:, :, K:2 * K].reshape(N, K, 1)
    mu = jnp.concatenate((mu_x, mu_y), axis=2)                 # (N, K, 2)
    raw_S = params[:, :, 3 * K:3 * K + 4 * K].reshape(N, K, 2, 2)
    L = jnp.tril(raw_S)
    Sigma = L @ jnp.swapaxes(L, -2, -1)
    raw_w = params[:, :, 2 * K:3 * K].reshape(N, K)
    w = jax.nn.softmax(raw_w, axis=1)

    xx = jnp.linspace(0.0, 1.0, width)
    yy = jnp.linspace(0.0, 1.0, height)
    gx, gy = jnp.meshgrid(xx, yy, indexing="ij")
    grid = jnp.stack((gx, gy), 2).reshape(height * width, 2)   # (HW, 2)

    d = grid[None, None, :, :] - mu[:, :, None, :]             # (N, K, HW, 2)
    # einsum 'abcli,ablm,abcnj->abc' with size-1 i,j:
    term = jnp.einsum("nkpl,nkl->nkp", d, jnp.sum(Sigma, axis=-1)) * jnp.sum(d, axis=-1)
    e = jnp.exp(-0.5 * term)
    g = jnp.sum(e, axis=1, keepdims=True)
    g = jnp.maximum(g, 1e-8)
    y = jnp.sum((e / g) * w[:, :, None], axis=1)
    y = jnp.clip(y, 0.0, 1.0)
    return y.reshape(-1, in_channels, height, width)


if __name__ == "__main__":
    # Module defaults: in_channels=3, num_mixtures=4, kernel=4
    in_channels, kernel = 3, 4
    B, H, W = 2, 16, 16
    P = 7 * kernel  # 3*K (mu_x, mu_y, raw_w) + 4*K (raw Sigma)

    key = jax.random.PRNGKey(0)
    params = 0.5 * jax.random.normal(key, (B, in_channels, P), dtype=jnp.float32)

    fwd = jax.jit(functools.partial(moe_forward, H, W,
                                    in_channels=in_channels, kernel=kernel))
    out = jax.block_until_ready(fwd(params))

    ref = moe_reference(H, W, params, in_channels=in_channels, kernel=kernel)
    assert out.shape == (B, in_channels, H, W), out.shape
    # z is exact f32 (no MXU rounding); only the EUP approx reciprocal differs.
    err = float(jnp.max(jnp.abs(out - ref)))
    assert err < 5e-3, err

    print("KERNEL_OK")
</pallas_src>

<mosaic_0001>
module attributes {stable_mosaic.version = 11 : i64} {
  func.func @_moe_kernel(%arg0: i32, %arg1: i32, %arg2: memref<4x8x8xf32, #tpu.memory_space<vmem>>, %arg3: memref<4x8x1xf32, #tpu.memory_space<vmem>>, %arg4: memref<8x256xf32, #tpu.memory_space<vmem>>) attributes {dimension_semantics = [#tpu.dimension_semantics<parallel>, #tpu.dimension_semantics<parallel>], iteration_bounds = array<i64: 1, 1>, scalar_prefetch = 0 : i64, scratch_operands = 0 : i64, tpu.core_type = #tpu.core_type<tc>, window_params = [{transform_indices = @transform_0, window_bounds = array<i64: 4, 8, 8>}, {transform_indices = @transform_1, window_bounds = array<i64: 4, 8, 1>}, {transform_indices = @transform_2, window_bounds = array<i64: 8, 256>}]} {
    %c256_i32 = arith.constant 256 : i32
    %0 = arith.muli %arg1, %c256_i32 : i32
    %1 = tpu.iota {dimensions = array<i32: 1>} : vector<1x256xi32>
    %2 = vector.broadcast %0 : i32 to vector<1x256xi32>
    %3 = arith.addi %1, %2 : vector<1x256xi32>
    %c255_i32 = arith.constant 255 : i32
    %4 = vector.broadcast %c255_i32 : i32 to vector<1x256xi32>
    %5 = arith.minsi %3, %4 : vector<1x256xi32>
    %6 = arith.sitofp %5 : vector<1x256xi32> to vector<1x256xf32>
    %cst = arith.constant 6.250000e-02 : f32
    %7 = vector.broadcast %cst : f32 to vector<1x256xf32>
    %8 = arith.mulf %6, %7 : vector<1x256xf32>
    %9 = math.floor %8 : vector<1x256xf32>
    %10 = arith.fptosi %9 : vector<1x256xf32> to vector<1x256xi32>
    %c16_i32 = arith.constant 16 : i32
    %11 = vector.broadcast %c16_i32 : i32 to vector<1x256xi32>
    %12 = arith.muli %10, %11 : vector<1x256xi32>
    %13 = arith.subi %5, %12 : vector<1x256xi32>
    %c16_i32_0 = arith.constant 16 : i32
    %14 = vector.broadcast %c16_i32_0 : i32 to vector<1x256xi32>
    %15 = arith.cmpi sge, %13, %14 : vector<1x256xi32>
    %c1_i32 = arith.constant 1 : i32
    %16 = vector.broadcast %c1_i32 : i32 to vector<1x256xi32>
    %17 = arith.addi %10, %16 : vector<1x256xi32>
    %c0_i32 = arith.constant 0 : i32
    %18 = vector.broadcast %c0_i32 : i32 to vector<1x256xi32>
    %19 = arith.cmpi slt, %13, %18 : vector<1x256xi32>
    %c1_i32_1 = arith.constant 1 : i32
    %20 = vector.broadcast %c1_i32_1 : i32 to vector<1x256xi32>
    %21 = arith.subi %10, %20 : vector<1x256xi32>
    %22 = arith.select %19, %21, %10 : vector<1x256xi1>, vector<1x256xi32>
    %23 = arith.select %15, %17, %22 : vector<1x256xi1>, vector<1x256xi32>
    %c16_i32_2 = arith.constant 16 : i32
    %24 = vector.broadcast %c16_i32_2 : i32 to vector<1x256xi32>
    %25 = arith.muli %23, %24 : vector<1x256xi32>
    %26 = arith.subi %5, %25 : vector<1x256xi32>
    %c16_i32_3 = arith.constant 16 : i32
    %27 = vector.broadcast %c16_i32_3 : i32 to vector<1x256xi32>
    %28 = arith.cmpi sge, %26, %27 : vector<1x256xi32>
    %c1_i32_4 = arith.constant 1 : i32
    %29 = vector.broadcast %c1_i32_4 : i32 to vector<1x256xi32>
    %30 = arith.addi %23, %29 : vector<1x256xi32>
    %c0_i32_5 = arith.constant 0 : i32
    %31 = vector.broadcast %c0_i32_5 : i32 to vector<1x256xi32>
    %32 = arith.cmpi slt, %26, %31 : vector<1x256xi32>
    %c1_i32_6 = arith.constant 1 : i32
    %33 = vector.broadcast %c1_i32_6 : i32 to vector<1x256xi32>
    %34 = arith.subi %23, %33 : vector<1x256xi32>
    %35 = arith.select %32, %34, %23 : vector<1x256xi1>, vector<1x256xi32>
    %36 = arith.select %28, %30, %35 : vector<1x256xi1>, vector<1x256xi32>
    %c16_i32_7 = arith.constant 16 : i32
    %37 = vector.broadcast %c16_i32_7 : i32 to vector<1x256xi32>
    %38 = arith.muli %36, %37 : vector<1x256xi32>
    %39 = arith.subi %5, %38 : vector<1x256xi32>
    %40 = arith.sitofp %36 : vector<1x256xi32> to vector<1x256xf32>
    %cst_8 = arith.constant 0.0666666701 : f32
    %41 = vector.broadcast %cst_8 : f32 to vector<1x256xf32>
    %42 = arith.mulf %40, %41 : vector<1x256xf32>
    %43 = arith.sitofp %39 : vector<1x256xi32> to vector<1x256xf32>
    %cst_9 = arith.constant 0.0666666701 : f32
    %44 = vector.broadcast %cst_9 : f32 to vector<1x256xf32>
    %45 = arith.mulf %43, %44 : vector<1x256xf32>
    %46 = arith.mulf %42, %42 : vector<1x256xf32>
    %47 = arith.mulf %45, %45 : vector<1x256xf32>
    %48 = arith.mulf %42, %45 : vector<1x256xf32>
    %c0 = arith.constant 0 : index
    %c0_10 = arith.constant 0 : index
    %c0_11 = arith.constant 0 : index
    %49 = vector.load %arg2[%c0, %c0_10, %c0_11] : memref<4x8x8xf32, #tpu.memory_space<vmem>>, vector<4x8x8xf32>
    %50 = vector.shape_cast %49 : vector<4x8x8xf32> to vector<32x8xf32>
    %51 = vector.extract_strided_slice %50 {offsets = [0, 0], sizes = [32, 1], strides = [1, 1]} : vector<32x8xf32> to vector<32x1xf32>
    %52 = vector.extract_strided_slice %50 {offsets = [0, 1], sizes = [32, 1], strides = [1, 1]} : vector<32x8xf32> to vector<32x1xf32>
    %53 = vector.broadcast %52 : vector<32x1xf32> to vector<32x256xf32>
    %54 = vector.broadcast %42 : vector<1x256xf32> to vector<32x256xf32>
    %55 = arith.mulf %53, %54 : vector<32x256xf32>
    %56 = vector.broadcast %51 : vector<32x1xf32> to vector<32x256xf32>
    %57 = arith.addf %56, %55 : vector<32x256xf32>
    %58 = vector.extract_strided_slice %50 {offsets = [0, 2], sizes = [32, 1], strides = [1, 1]} : vector<32x8xf32> to vector<32x1xf32>
    %59 = vector.broadcast %58 : vector<32x1xf32> to vector<32x256xf32>
    %60 = vector.broadcast %45 : vector<1x256xf32> to vector<32x256xf32>
    %61 = arith.mulf %59, %60 : vector<32x256xf32>
    %62 = arith.addf %57, %61 : vector<32x256xf32>
    %63 = vector.extract_strided_slice %50 {offsets = [0, 3], sizes = [32, 1], strides = [1, 1]} : vector<32x8xf32> to vector<32x1xf32>
    %64 = vector.broadcast %63 : vector<32x1xf32> to vector<32x256xf32>
    %65 = vector.broadcast %46 : vector<1x256xf32> to vector<32x256xf32>
    %66 = arith.mulf %64, %65 : vector<32x256xf32>
    %67 = arith.addf %62, %66 : vector<32x256xf32>
    %68 = vector.extract_strided_slice %50 {offsets = [0, 4], sizes = [32, 1], strides = [1, 1]} : vector<32x8xf32> to vector<32x1xf32>
    %69 = vector.broadcast %68 : vector<32x1xf32> to vector<32x256xf32>
    %70 = vector.broadcast %47 : vector<1x256xf32> to vector<32x256xf32>
    %71 = arith.mulf %69, %70 : vector<32x256xf32>
    %72 = arith.addf %67, %71 : vector<32x256xf32>
    %73 = vector.extract_strided_slice %50 {offsets = [0, 5], sizes = [32, 1], strides = [1, 1]} : vector<32x8xf32> to vector<32x1xf32>
    %74 = vector.broadcast %73 : vector<32x1xf32> to vector<32x256xf32>
    %75 = vector.broadcast %48 : vector<1x256xf32> to vector<32x256xf32>
    %76 = arith.mulf %74, %75 : vector<32x256xf32>
    %77 = arith.addf %72, %76 : vector<32x256xf32>
    %78 = math.exp %77 : vector<32x256xf32>
    %79 = vector.extract_strided_slice %78 {offsets = [0, 0], sizes = [8, 256], strides = [1, 1]} : vector<32x256xf32> to vector<8x256xf32>
    %80 = vector.extract_strided_slice %78 {offsets = [0, 0], sizes = [8, 256], strides = [1, 1]} : vector<32x256xf32> to vector<8x256xf32>
    %c0_12 = arith.constant 0 : index
    %c0_13 = arith.constant 0 : index
    %c0_14 = arith.constant 0 : index
    %81 = vector.load %arg3[%c0_12, %c0_13, %c0_14] : memref<4x8x1xf32, #tpu.memory_space<vmem>>, vector<1x8x1xf32>
    %82 = vector.shape_cast %81 : vector<1x8x1xf32> to vector<8x1xf32>
    %83 = vector.broadcast %82 : vector<8x1xf32> to vector<8x256xf32>
    %84 = arith.mulf %80, %83 : vector<8x256xf32>
    %85 = vector.extract_strided_slice %78 {offsets = [8, 0], sizes = [8, 256], strides = [1, 1]} : vector<32x256xf32> to vector<8x256xf32>
    %86 = arith.addf %79, %85 : vector<8x256xf32>
    %c1 = arith.constant 1 : index
    %c0_15 = arith.constant 0 : index
    %c0_16 = arith.constant 0 : index
    %87 = vector.load %arg3[%c1, %c0_15, %c0_16] : memref<4x8x1xf32, #tpu.memory_space<vmem>>, vector<1x8x1xf32>
    %88 = vector.shape_cast %87 : vector<1x8x1xf32> to vector<8x1xf32>
    %89 = vector.broadcast %88 : vector<8x1xf32> to vector<8x256xf32>
    %90 = arith.mulf %85, %89 : vector<8x256xf32>
    %91 = arith.addf %84, %90 : vector<8x256xf32>
    %92 = vector.extract_strided_slice %78 {offsets = [16, 0], sizes = [8, 256], strides = [1, 1]} : vector<32x256xf32> to vector<8x256xf32>
    %93 = arith.addf %86, %92 : vector<8x256xf32>
    %c2 = arith.constant 2 : index
    %c0_17 = arith.constant 0 : index
    %c0_18 = arith.constant 0 : index
    %94 = vector.load %arg3[%c2, %c0_17, %c0_18] : memref<4x8x1xf32, #tpu.memory_space<vmem>>, vector<1x8x1xf32>
    %95 = vector.shape_cast %94 : vector<1x8x1xf32> to vector<8x1xf32>
    %96 = vector.broadcast %95 : vector<8x1xf32> to vector<8x256xf32>
    %97 = arith.mulf %92, %96 : vector<8x256xf32>
    %98 = arith.addf %91, %97 : vector<8x256xf32>
    %99 = vector.extract_strided_slice %78 {offsets = [24, 0], sizes = [8, 256], strides = [1, 1]} : vector<32x256xf32> to vector<8x256xf32>
    %100 = arith.addf %93, %99 : vector<8x256xf32>
    %c3 = arith.constant 3 : index
    %c0_19 = arith.constant 0 : index
    %c0_20 = arith.constant 0 : index
    %101 = vector.load %arg3[%c3, %c0_19, %c0_20] : memref<4x8x1xf32, #tpu.memory_space<vmem>>, vector<1x8x1xf32>
    %102 = vector.shape_cast %101 : vector<1x8x1xf32> to vector<8x1xf32>
    %103 = vector.broadcast %102 : vector<8x1xf32> to vector<8x256xf32>
    %104 = arith.mulf %99, %103 : vector<8x256xf32>
    %105 = arith.addf %98, %104 : vector<8x256xf32>
    %cst_21 = arith.constant 9.99999993E-9 : f32
    %106 = vector.broadcast %cst_21 : f32 to vector<8x256xf32>
    %107 = arith.maximumf %100, %106 : vector<8x256xf32>
    %108 = tpu.reciprocal %107 {approx = true} : vector<8x256xf32> -> vector<8x256xf32>
    %109 = arith.mulf %105, %108 : vector<8x256xf32>
    %cst_22 = arith.constant 0.000000e+00 : f32
    %cst_23 = arith.constant 1.000000e+00 : f32
    %110 = vector.broadcast %cst_22 : f32 to vector<8x256xf32>
    %111 = arith.maximumf %110, %109 : vector<8x256xf32>
    %112 = vector.broadcast %cst_23 : f32 to vector<8x256xf32>
    %113 = arith.minimumf %112, %111 : vector<8x256xf32>
    %c0_24 = arith.constant 0 : index
    %c0_25 = arith.constant 0 : index
    %114 = vector.load %arg4[%c0_24, %c0_25] : memref<8x256xf32, #tpu.memory_space<vmem>>, vector<8x256xf32>
    tpu.vector_store %arg4[%c0_24, %c0_25], %113 {strides = array<i32>} : memref<8x256xf32, #tpu.memory_space<vmem>>, vector<8x256xf32>,
    return
  }
  func.func @transform_0(%arg0: i32, %arg1: i32) -> (i32, i32, i32) {
    %c0_i32 = arith.constant 0 : i32
    %c0_i32_0 = arith.constant 0 : i32
    %c0_i32_1 = arith.constant 0 : i32
    return %c0_i32, %arg0, %c0_i32_0 : i32, i32, i32
  }
  func.func @transform_1(%arg0: i32, %arg1: i32) -> (i32, i32, i32) {
    %c0_i32 = arith.constant 0 : i32
    %c0_i32_0 = arith.constant 0 : i32
    %c0_i32_1 = arith.constant 0 : i32
    return %c0_i32, %arg0, %c0_i32_0 : i32, i32, i32
  }
  func.func @transform_2(%arg0: i32, %arg1: i32) -> (i32, i32) {
    %c0_i32 = arith.constant 0 : i32
    return %arg0, %arg1 : i32, i32
  }
}

</mosaic_0001>

<bundles_post_ra>
// kernel: div.5
= control target key start
LH: loop header
LB: loop body
LE: loop exit
PB: predicated region body
PF: predicated region fallthrough
CT: control target
= control target key end

     0   :  { %vm7_vm0 = vcmask 23552   ;;  %vm13_vm1 = vcmask 48152   ;;  %s39_s0 = inlined_call_operand.vmem [shape: f32[2,3], index: 0, kind: input, shape index: {}]   ;;  %s40_s1 = inlined_call_operand.vmem [shape: f32[6], index: 1, kind: output, shape index: {}]  }
   0x1   :  { %v4_v0 = vld [vmem:[%s39_s0] sm:$0x3]  ;;  %s22_s0 = smov 3  }
   0x2   :  { %5 = vst [vmem:[#allocation1] sm:$0x3] %v4_v0 }
   0x9   :  { %v10_v1 = vld [vmem:[#allocation1 + $0x1] sm:$0x1]   ;;  %v6_v2 = vld [vmem:[#allocation1] sm:$0x1]  }
   0xa   :  { %11 = vrot.lane.b32.xlu0 %v10_v1, %s22_s0  ;;  %8 = vst.msk [vmem:[#allocation0] sm:$0x1] %vm7_vm0, %v6_v2  }
  0x7c   :  { %v12_v3 = vpop.permute.xlu0 %11  }
  0x7d   :  { %14 = vst.msk [vmem:[#allocation0] sm:$0x1] %vm13_vm1, %v12_v3  }
  0x84   :  { %v18_v4 = vld [vmem:[#allocation0] sm:$0x1] }
  0x85   :  { %20 = vst [vmem:[%s40_s1] sm:$0x1] %v18_v4 }

// kernel: moe_forward.1
= control target key start
LH: loop header
LB: loop body
LE: loop exit
PB: predicated region body
PF: predicated region fallthrough
CT: control target
= control target key end

     0   :  { %7 = vsyncpa [#allocation3], 0  ;;  %s653_s0 = inlined_call_operand.hbm [shape: f32[4,8,8], index: 0, kind: input, shape index: {}]   ;;  %s654_s1 = inlined_call_operand.hbm [shape: f32[4,8,1], index: 1, kind: input, shape index: {}]   ;;  %s655_s2 = inlined_call_operand.hbm [shape: f32[8,256], index: 2, kind: output, shape index: {}]  }
   0x1   :  { %8 = vsyncpa [#allocation6], 0 }
   0x2   :  { %9 = vsyncpa [#allocation4], 0  ;;  %s518_s9 = smov [#allocation2]   ;;  %s446_s13 = scalar_lea.hbm %s653_s0, 512 }
   0x3   :  { %s15_s10 = sshll.u32 %s518_s9, 4  ;;  %p447_p0 = scmp.ne.s32.totalorder %s653_s0, %s446_s13  ;;  %s16_s10 = int_to_ptr.vmem [resolvable:$true] %s15_s10 }
   0x4   :  { %p450_p1 = scmp.lt.u32.totalorder %s446_s13, %s653_s0 }
   0x6   :  { %p452_p2 = pnand %p450_p1, %p447_p0 }
   0x8   :  { %455 = shalt.err (!%p452_p2)
}
   0x9   :  { %s456_s18 = scalar_lea.vmem %s16_s10, 512  ;;  %p461_p4 = scmp.lt.s32.totalorder %s16_s10, %s16_s10 }
   0xa   :  { %p457_p3 = scmp.ne.s32.totalorder %s16_s10, %s456_s18  ;;  %p462_p5 = scmp.lt.s32.totalorder %s456_s18, %s456_s18 }
   0xc   :  { %p463_p6 = por %p462_p5, %p461_p4 }
   0xe   :  { %p464_p7 = pnand %p463_p6, %p457_p3 }
  0x10   :  { %467 = shalt.err (!%p464_p7)
}
  0x11   :  { %s519_s19 = smov 128   ;;  %s520_s20 = smov 8  }
  0x12   :  { %21 = dma.hbm_to_vmem [thread:$0]  %s653_s0, 512, %s16_s10, [#allocation3], %s519_s19, %s519_s19, %s520_s20  }
  0x13   :  { %s521_s23 = smov [#allocation5]   ;;  %s468_s27 = scalar_lea.hbm %s654_s1, 512 }
  0x14   :  { %s27_s24 = sshll.u32 %s521_s23, 4  ;;  %p469_p8 = scmp.ne.s32.totalorder %s654_s1, %s468_s27  ;;  %s28_s24 = int_to_ptr.vmem [resolvable:$true] %s27_s24 }
  0x15   :  { %p472_p9 = scmp.lt.u32.totalorder %s468_s27, %s654_s1 }
  0x17   :  { %p474_p10 = pnand %p472_p9, %p469_p8 }
  0x19   :  { %477 = shalt.err (!%p474_p10)
}
  0x1a   :  { %s478_s4 = scalar_lea.vmem %s28_s24, 512  ;;  %p483_p12 = scmp.lt.s32.totalorder %s28_s24, %s28_s24 }
  0x1b   :  { %p479_p11 = scmp.ne.s32.totalorder %s28_s24, %s478_s4  ;;  %p484_p13 = scmp.lt.s32.totalorder %s478_s4, %s478_s4 }
  0x1d   :  { %p485_p0 = por %p484_p13, %p483_p12 }
  0x1f   :  { %p486_p1 = pnand %p485_p0, %p479_p11 }
  0x21   :  { %489 = shalt.err (!%p486_p1)
}
  0x22   :  { %33 = dma.hbm_to_vmem [thread:$0]  %s654_s1, 512, %s28_s24, [#allocation6], %s519_s19, %s519_s19, %s520_s20  }
  0x23   :  { %512 = dma.done.wait [#allocation3], 512  }
  0x24   :  { %513 = vsyncadd [#allocation3], 4294966784 }
  0x25   :  { %514 = dma.done.wait [#allocation6], 512  }
  0x26   :  { %515 = vsyncadd [#allocation6], 4294966784  ;;  %v522_v0 = vmov 1   ;;  %v111_v1 = vld [vmem:[#allocation2 + $0x10] sm:$0xff]  ;;  %v109_v2 = vld [vmem:[#allocation2] sm:$0xff]  ;;  %v523_v4 = vmov 0   ;;  %v41_v14 = vlaneseq }
  0x27   :  { %404 = vset.pattern.permute.xlu1 %v522_v0  ;;  %403 = vset.pattern.permute.xlu0 %v522_v0  ;;  %v110_v3 = vld [vmem:[#allocation2 + $0x8] sm:$0xff]  ;;  %v524_v5 = vmov 2   ;;  %v112_v6 = vld [vmem:[#allocation2 + $0x18] sm:$0xff]  ;;  %v525_v7 = vmov 3   ;;  %v526_v8 = vmov 4   ;;  %v527_v9 = vmov 5  }
  0x28   :  { %125 = vperm.xlu1 %404, %v111_v1   ;;  %115 = vperm.xlu0 %403, %v109_v2   ;;  %v309_v10 = vld [vmem:[#allocation5] sm:$0xff]  ;;  %v346_v11 = vld [vmem:[#allocation5 + $0x18] sm:$0xff]  ;;  %v320_v12 = vld [vmem:[#allocation5 + $0x8] sm:$0xff]  ;;  %v42_v15 = vand.u32 127, %v41_v14  ;;  %s528_s1 = smov [#allocation7]  }
  0x29   :  { %v333_v13 = vld [vmem:[#allocation5 + $0x10] sm:$0xff]  ;;  %s374_s6 = sshll.u32 %s528_s1, 4  ;;  %s375_s6 = int_to_ptr.vmem [resolvable:$true] %s374_s6 }
  0x2a   :  { %v43_v16 = vadd.s32 128, %v42_v15  ;;  %v51_v18 = vcvt.s32.f32 %v42_v15  ;;  %s490_s7 = scalar_lea.vmem %s375_s6, 256  ;;  %p495_p3 = scmp.lt.s32.totalorder %s375_s6, %s375_s6 }
  0x2b   :  { %p491_p2 = scmp.ne.s32.totalorder %s375_s6, %s490_s7  ;;  %p496_p4 = scmp.lt.s32.totalorder %s490_s7, %s490_s7 }
  0x2c   :  { %405 = vset.pattern.permute.xlu1 %v523_v4  ;;  %406 = vset.pattern.permute.xlu0 %v523_v4  ;;  %vm49_vm0 = vcmp.lt.s32.totalorder %v43_v16, 255  ;;  %v53_v20 = vmul.f32 0.0625, %v51_v18 }
  0x2d   :  { %142 = vperm.xlu1 %405, %v109_v2   ;;  %146 = vperm.xlu0 %406, %v110_v3   ;;  %v50_v17 = vsel %vm49_vm0, %v43_v16, 255  ;;  %p497_p5 = por %p496_p4, %p495_p3 }
  0x2e   :  { %v52_v19 = vcvt.s32.f32 %v50_v17  ;;  %v55_v22 = vfloor.f32 %v53_v20 }
  0x2f   :  { %p498_p6 = pnand %p497_p5, %p491_p2 }
  0x30   :  { %v54_v21 = vmul.f32 0.0625, %v52_v19  ;;  %v388_v24 = vtrunc.f32 %v55_v22 }
  0x31   :  { %408 = vset.pattern.permute.xlu1 %v524_v5  ;;  %407 = vset.pattern.permute.xlu0 %v522_v0 }
  0x32   :  { %166 = vperm.xlu1 %408, %v109_v2   ;;  %120 = vperm.xlu0 %407, %v110_v3   ;;  %v56_v23 = vfloor.f32 %v54_v21  ;;  %v389_v26 = vcvt.f32.s32 %v388_v24 }
  0x34   :  { %v390_v25 = vtrunc.f32 %v56_v23  ;;  %v59_v28 = vmul.u32 16, %v389_v26  ;;  %v384_v34 = vadd.s32 4294967295, %v389_v26  ;;  %v65_v36 = vadd.s32 1, %v389_v26 }
  0x36   :  { %170 = vperm.xlu1 %408, %v110_v3   ;;  %130 = vperm.xlu0 %407, %v112_v6   ;;  %v391_v27 = vcvt.f32.s32 %v390_v25  ;;  %v61_v31 = vsub.s32 %v42_v15, %v59_v28 }
  0x38   :  { %v60_v29 = vmul.u32 16, %v391_v27  ;;  %vm67_vm1 = vcmp.lt.s32.totalorder %v61_v31, 0  ;;  %v385_v35 = vadd.s32 4294967295, %v391_v27  ;;  %vm63_vm3 = vcmp.ge.s32.totalorder %v61_v31, 16 }
  0x39   :  { %v66_v37 = vadd.s32 1, %v391_v27  ;;  %v71_v38 = vsel %vm67_vm1, %v384_v34, %v389_v26 }
  0x3a   :  { %409 = vset.pattern.permute.xlu1 %v523_v4  ;;  %411 = vset.pattern.permute.xlu0 %v525_v7  ;;  %v62_v32 = vsub.s32 %v50_v17, %v60_v29  ;;  %v73_v41 = vsel %vm63_vm3, %v65_v36, %v71_v38 }
  0x3b   :  { %150 = vperm.xlu1 %409, %v111_v1   ;;  %198 = vperm.xlu0 %411, %v109_v2   ;;  %v75_v45 = vmul.u32 16, %v73_v41  ;;  %v386_v51 = vadd.s32 4294967295, %v73_v41  ;;  %v81_v54 = vadd.s32 1, %v73_v41 }
  0x3c   :  { %vm68_vm2 = vcmp.lt.s32.totalorder %v62_v32, 0  ;;  %vm64_vm4 = vcmp.ge.s32.totalorder %v62_v32, 16 }
  0x3d   :  { %v72_v40 = vsel %vm68_vm2, %v385_v35, %v391_v27  ;;  %v77_v48 = vsub.s32 %v42_v15, %v75_v45 }
  0x3e   :  { %v74_v42 = vsel %vm64_vm4, %v66_v37, %v72_v40 }
  0x3f   :  { %410 = vset.pattern.permute.xlu1 %v524_v5  ;;  %414 = vset.pattern.permute.xlu0 %v524_v5  ;;  %v76_v46 = vmul.u32 16, %v74_v42  ;;  %vm83_vm5 = vcmp.lt.s32.totalorder %v77_v48, 0  ;;  %v387_v52 = vadd.s32 4294967295, %v74_v42  ;;  %vm79_vm7 = vcmp.ge.s32.totalorder %v77_v48, 16 }
  0x40   :  { %174 = vperm.xlu1 %410, %v111_v1   ;;  %178 = vperm.xlu0 %414, %v112_v6   ;;  %v82_v56 = vadd.s32 1, %v74_v42  ;;  %v87_v57 = vsel %vm83_vm5, %v386_v51, %v73_v41 }
  0x41   :  { %v78_v50 = vsub.s32 %v50_v17, %v76_v46  ;;  %v89_v60 = vsel %vm79_vm7, %v81_v54, %v87_v57 }
  0x42   :  { %v91_v62 = vmul.u32 16, %v89_v60  ;;  %v95_v5 = vcvt.s32.f32 %v89_v60 }
  0x43   :  { %vm84_vm6 = vcmp.lt.s32.totalorder %v78_v50, 0  ;;  %vm80_vm8 = vcmp.ge.s32.totalorder %v78_v50, 16 }
  0x44   :  { %412 = vset.pattern.permute.xlu1 %v525_v7  ;;  %417 = vset.pattern.permute.xlu0 %v526_v8  ;;  %v88_v58 = vsel %vm84_vm6, %v387_v52, %v74_v42 }
  0x45   :  { %202 = vperm.xlu1 %412, %v110_v3   ;;  %234 = vperm.xlu0 %417, %v110_v3   ;;  %v90_v61 = vsel %vm80_vm8, %v82_v56, %v88_v58 }
  0x46   :  { %v92_v63 = vmul.u32 16, %v90_v61 }
  0x49   :  { %413 = vset.pattern.permute.xlu1 %v523_v4  ;;  %420 = vset.pattern.permute.xlu0 %v527_v9 }
  0x4a   :  { %154 = vperm.xlu1 %413, %v112_v6   ;;  %262 = vperm.xlu0 %420, %v109_v2  }
  0x4e   :  { %415 = vset.pattern.permute.xlu1 %v525_v7  ;;  %270 = vperm.xlu0 %420, %v111_v1  }
  0x4f   :  { %206 = vperm.xlu1 %415, %v111_v1  }
  0x52   :  { %424 = vset.pattern.permute.xlu0 %v523_v4 }
  0x53   :  { %416 = vset.pattern.permute.xlu1 %v526_v8  ;;  %312 = vperm.xlu0 %424, %v309_v10  }
  0x54   :  { %230 = vperm.xlu1 %416, %v109_v2   ;;  %v93_v2 = vsub.s32 %v42_v15, %v91_v62 }
  0x57   :  { %349 = vperm.xlu0 %424, %v346_v11   ;;  %v97_v11 = vmul.f32 0.06666667, %v95_v5 }
  0x58   :  { %418 = vset.pattern.permute.xlu1 %v525_v7 }
  0x59   :  { %210 = vperm.xlu1 %418, %v112_v6   ;;  %v584_v20 = vmul.f32 %v97_v11, %v97_v11 }
  0x5d   :  { %419 = vset.pattern.permute.xlu1 %v526_v8 }
  0x5e   :  { %238 = vperm.xlu1 %419, %v111_v1  }
  0x62   :  { %421 = vset.pattern.permute.xlu1 %v527_v9 }
  0x63   :  { %266 = vperm.xlu1 %421, %v110_v3   ;;  %v94_v3 = vsub.s32 %v50_v17, %v92_v63 }
  0x67   :  { %422 = vset.pattern.permute.xlu1 %v526_v8  ;;  %v96_v8 = vcvt.s32.f32 %v90_v61 }
  0x68   :  { %242 = vperm.xlu1 %422, %v112_v6  }
  0x6c   :  { %423 = vset.pattern.permute.xlu1 %v527_v9  ;;  %v100_v9 = vcvt.s32.f32 %v94_v3 }
  0x6d   :  { %274 = vperm.xlu1 %423, %v112_v6   ;;  %v99_v6 = vcvt.s32.f32 %v93_v2 }
  0x6e   :  { %v582_v14 = vmul.f32 0.06666667, %v100_v9 }
  0x70   :  { %v593_v25 = vmul.f32 %v582_v14, %v582_v14 }
  0x71   :  { %425 = vset.pattern.permute.xlu1 %v523_v4 }
  0x72   :  { %323 = vperm.xlu1 %425, %v320_v12   ;;  %v101_v12 = vmul.f32 0.06666667, %v99_v6 }
  0x74   :  { %v589_v24 = vmul.f32 %v101_v12, %v101_v12  ;;  %v595_v27 = vmul.f32 %v101_v12, %v97_v11 }
  0x76   :  { %336 = vperm.xlu1 %425, %v333_v13   ;;  %v98_v13 = vmul.f32 0.06666667, %v96_v8 }
  0x78   :  { %v586_v22 = vmul.f32 %v98_v13, %v98_v13  ;;  %v602_v38 = vmul.f32 %v582_v14, %v98_v13 }
  0xa7   :  { %v568_v30 = vpop.permute.xlu1 %125  ;;  %v116_v43 = vpop.permute.xlu0 %115 }
  0xa8   :  { %v133_v18 = vmul.f32 %v116_v43, %v97_v11  ;;  %v134_v15 = vmul.f32 %v116_v43, %v98_v13  ;;  %v138_v40 = vmul.f32 %v568_v30, %v98_v13 }
  0xac   :  { %v570_v33 = vpop.permute.xlu1 %142  ;;  %v147_v49 = vpop.permute.xlu0 %146 }
  0xad   :  { %v157_v28 = vadd.f32 %v570_v33, %v133_v18  ;;  %v158_v35 = vadd.f32 %v570_v33, %v134_v15 }
  0xb1   :  { %v167_v39 = vpop.permute.xlu1 %166  ;;  %v121_v55 = vpop.permute.xlu0 %120 }
  0xb2   :  { %v135_v19 = vmul.f32 %v121_v55, %v97_v11  ;;  %v136_v17 = vmul.f32 %v121_v55, %v98_v13  ;;  %v181_v21 = vmul.f32 %v167_v39, %v101_v12  ;;  %v182_v23 = vmul.f32 %v167_v39, %v582_v14 }
  0xb3   :  { %v137_v39 = vmul.f32 %v568_v30, %v97_v11 }
  0xb4   :  { %v159_v29 = vadd.f32 %v147_v49, %v135_v19  ;;  %v160_v36 = vadd.f32 %v147_v49, %v136_v17  ;;  %v189_v41 = vadd.f32 %v181_v21, %v157_v28  ;;  %v190_v43 = vadd.f32 %v182_v23, %v158_v35 }
  0xb5   :  { %v171_v44 = vpop.permute.xlu1 %170  ;;  %v576_v0 = vpop.permute.xlu0 %130 }
  0xb6   :  { %v183_v31 = vmul.f32 %v171_v44, %v101_v12  ;;  %v184_v37 = vmul.f32 %v171_v44, %v582_v14  ;;  %v139_v45 = vmul.f32 %v576_v0, %v97_v11  ;;  %v140_v5 = vmul.f32 %v576_v0, %v98_v13 }
  0xb8   :  { %v191_v49 = vadd.f32 %v183_v31, %v159_v29  ;;  %v192_v52 = vadd.f32 %v184_v37, %v160_v36 }
  0xba   :  { %v572_v47 = vpop.permute.xlu1 %150  ;;  %v199_v4 = vpop.permute.xlu0 %198 }
  0xbb   :  { %v213_v32 = vmul.f32 %v199_v4, %v584_v20  ;;  %v214_v44 = vmul.f32 %v199_v4, %v586_v22  ;;  %v161_v30 = vadd.f32 %v572_v47, %v137_v39  ;;  %v162_v54 = vadd.f32 %v572_v47, %v138_v40 }
  0xbd   :  { %v221_v50 = vadd.f32 %v213_v32, %v189_v41  ;;  %v222_v3 = vadd.f32 %v214_v44, %v190_v43 }
  0xbf   :  { %v574_v53 = vpop.permute.xlu1 %174  ;;  %v580_v10 = vpop.permute.xlu0 %178 }
  0xc0   :  { %v185_v51 = vmul.f32 %v574_v53, %v101_v12  ;;  %v186_v55 = vmul.f32 %v574_v53, %v582_v14  ;;  %v187_v8 = vmul.f32 %v580_v10, %v101_v12  ;;  %v188_v0 = vmul.f32 %v580_v10, %v582_v14 }
  0xc2   :  { %v193_v4 = vadd.f32 %v185_v51, %v161_v30  ;;  %v194_v6 = vadd.f32 %v186_v55, %v162_v54 }
  0xc4   :  { %v203_v59 = vpop.permute.xlu1 %202  ;;  %v235_v26 = vpop.permute.xlu0 %234 }
  0xc5   :  { %v215_v46 = vmul.f32 %v203_v59, %v584_v20  ;;  %v216_v33 = vmul.f32 %v203_v59, %v586_v22  ;;  %v247_v63 = vmul.f32 %v235_v26, %v589_v24  ;;  %v248_v2 = vmul.f32 %v235_v26, %v593_v25 }
  0xc7   :  { %v223_v61 = vadd.f32 %v215_v46, %v191_v49  ;;  %v224_v62 = vadd.f32 %v216_v33, %v192_v52 }
  0xc9   :  { %v578_v1 = vpop.permute.xlu1 %154  ;;  %v263_v48 = vpop.permute.xlu0 %262  ;;  %v255_v21 = vadd.f32 %v247_v63, %v223_v61  ;;  %v256_v23 = vadd.f32 %v248_v2, %v224_v62 }
  0xca   :  { %v277_v60 = vmul.f32 %v263_v48, %v595_v27  ;;  %v278_v9 = vmul.f32 %v263_v48, %v602_v38  ;;  %v163_v29 = vadd.f32 %v578_v1, %v139_v45  ;;  %v164_v31 = vadd.f32 %v578_v1, %v140_v5 }
  0xcc   :  { %v195_v33 = vadd.f32 %v187_v8, %v163_v29  ;;  %v196_v48 = vadd.f32 %v188_v0, %v164_v31 }
  0xcd   :  { %v271_v11 = vpop.permute.xlu0 %270 }
  0xce   :  { %v207_v7 = vpop.permute.xlu1 %206  ;;  %v281_v28 = vmul.f32 %v271_v11, %v595_v27  ;;  %v282_v40 = vmul.f32 %v271_v11, %v602_v38 }
  0xcf   :  { %v217_v57 = vmul.f32 %v207_v7, %v584_v20  ;;  %v218_v47 = vmul.f32 %v207_v7, %v586_v22 }
  0xd1   :  { %v226_v13 = vadd.f32 %v218_v47, %v194_v6 }
  0xd2   :  { %v313_v8 = vpop.permute.xlu0 %312 }
  0xd3   :  { %v231_v16 = vpop.permute.xlu1 %230 }
  0xd4   :  { %v245_v42 = vmul.f32 %v231_v16, %v589_v24  ;;  %v246_v58 = vmul.f32 %v231_v16, %v593_v25  ;;  %v225_v16 = vadd.f32 %v217_v57, %v193_v4 }
  0xd6   :  { %v253_v59 = vadd.f32 %v245_v42, %v221_v50  ;;  %v254_v18 = vadd.f32 %v246_v58, %v222_v3 }
  0xd8   :  { %v211_v34 = vpop.permute.xlu1 %210  ;;  %v285_v19 = vadd.f32 %v277_v60, %v253_v59  ;;  %v286_v36 = vadd.f32 %v278_v9, %v254_v18 }
  0xd9   :  { %v219_v41 = vmul.f32 %v211_v34, %v584_v20  ;;  %v220_v42 = vmul.f32 %v211_v34, %v586_v22 }
  0xda   :  { %v293_v37 = vmul.f32 1.442695, %v285_v19  ;;  %v295_v49 = vmul.f32 1.442695, %v286_v36 }
  0xdb   :  { %v227_v50 = vadd.f32 %v219_v41, %v195_v33  ;;  %v228_v51 = vadd.f32 %v220_v42, %v196_v48 }
  0xdc   :  { %426 = vpow2.f32 %v293_v37 }
  0xdd   :  { %v239_v56 = vpop.permute.xlu1 %238 }
  0xde   :  { %v249_v53 = vmul.f32 %v239_v56, %v589_v24  ;;  %v250_v15 = vmul.f32 %v239_v56, %v593_v25 }
  0xe0   :  { %v257_v12 = vadd.f32 %v249_v53, %v225_v16  ;;  %v258_v39 = vadd.f32 %v250_v15, %v226_v13 }
  0xe2   :  { %v267_v17 = vpop.permute.xlu1 %266  ;;  %v289_v43 = vadd.f32 %v281_v28, %v257_v12  ;;  %v290_v44 = vadd.f32 %v282_v40, %v258_v39 }
  0xe3   :  { %v279_v7 = vmul.f32 %v267_v17, %v595_v27  ;;  %v280_v26 = vmul.f32 %v267_v17, %v602_v38 }
  0xe4   :  { %v301_v52 = vmul.f32 1.442695, %v289_v43  ;;  %v303_v55 = vmul.f32 1.442695, %v290_v44 }
  0xe5   :  { %v287_v32 = vadd.f32 %v279_v7, %v255_v21  ;;  %v288_v35 = vadd.f32 %v280_v26, %v256_v23  ;;  %v350_v21 = vpop.permute.xlu0 %349 }
  0xe6   :  { %v427_v58 = vpop.eup %426 }
  0xe7   :  { %v297_v10 = vmul.f32 1.442695, %v287_v32  ;;  %v243_v14 = vpop.permute.xlu1 %242  ;;  %v299_v46 = vmul.f32 1.442695, %v288_v35  ;;  %v315_v15 = vmul.f32 %v427_v58, %v313_v8 }
  0xe8   :  { %v251_v45 = vmul.f32 %v243_v14, %v589_v24  ;;  %v252_v1 = vmul.f32 %v243_v14, %v593_v25 }
  0xe9   :  { %428 = vpow2.f32 %v297_v10 }
  0xea   :  { %430 = vpow2.f32 %v299_v46  ;;  %v259_v22 = vadd.f32 %v251_v45, %v227_v50  ;;  %v260_v34 = vadd.f32 %v252_v1, %v228_v51 }
  0xeb   :  { %432 = vpow2.f32 %v295_v49 }
  0xec   :  { %v275_v20 = vpop.permute.xlu1 %274  ;;  %434 = vpow2.f32 %v301_v52 }
  0xed   :  { %v283_v30 = vmul.f32 %v275_v20, %v595_v27  ;;  %v284_v54 = vmul.f32 %v275_v20, %v602_v38  ;;  %436 = vpow2.f32 %v303_v55 }
  0xef   :  { %v291_v24 = vadd.f32 %v283_v30, %v259_v22  ;;  %v292_v56 = vadd.f32 %v284_v54, %v260_v34 }
  0xf1   :  { %v305_v25 = vmul.f32 1.442695, %v291_v24  ;;  %v307_v57 = vmul.f32 1.442695, %v292_v56  ;;  %v324_v38 = vpop.permute.xlu1 %323 }
  0xf3   :  { %438 = vpow2.f32 %v305_v25  ;;  %v429_v59 = vpop.eup %428 }
  0xf4   :  { %440 = vpow2.f32 %v307_v57  ;;  %v431_v60 = vpop.eup %430  ;;  %v317_v62 = vadd.f32 %v429_v59, %v427_v58  ;;  %v326_v11 = vmul.f32 %v429_v59, %v324_v38 }
  0xf5   :  { %v433_v61 = vpop.eup %432  ;;  %v327_v18 = vmul.f32 %v431_v60, %v324_v38  ;;  %v337_v19 = vpop.permute.xlu1 %336 }
  0xf6   :  { %v318_v63 = vadd.f32 %v433_v61, %v431_v60  ;;  %v435_v2 = vpop.eup %434  ;;  %v316_v17 = vmul.f32 %v433_v61, %v313_v8  ;;  %v328_v23 = vadd.f32 %v326_v11, %v315_v15 }
  0xf7   :  { %v437_v27 = vpop.eup %436  ;;  %v330_v3 = vadd.f32 %v435_v2, %v317_v62  ;;  %v339_v7 = vmul.f32 %v435_v2, %v337_v19 }
  0xf8   :  { %v331_v47 = vadd.f32 %v437_v27, %v318_v63  ;;  %v329_v26 = vadd.f32 %v327_v18, %v316_v17  ;;  %v340_v0 = vmul.f32 %v437_v27, %v337_v19 }
  0xf9   :  { %v341_v28 = vadd.f32 %v339_v7, %v328_v23 }
  0xfa   :  { %v342_v29 = vadd.f32 %v340_v0, %v329_v26 }
  0xfd   :  { %v439_v4 = vpop.eup %438 }
  0xfe   :  { %v441_v53 = vpop.eup %440  ;;  %v343_v5 = vadd.f32 %v439_v4, %v330_v3  ;;  %v352_v13 = vmul.f32 %v439_v4, %v350_v21 }
  0xff   :  { %v344_v6 = vadd.f32 %v441_v53, %v331_v47  ;;  %v353_v12 = vmul.f32 %v441_v53, %v350_v21 }
 0x100   :  { %v356_v9 = vmax.f32 %v343_v5, 1e-08  ;;  %v354_v31 = vadd.f32 %v352_v13, %v341_v28 }
 0x101   :  { %v357_v16 = vmax.f32 %v344_v6, 1e-08  ;;  %v355_v35 = vadd.f32 %v353_v12, %v342_v29 }
 0x102   :  { %442 = vrcp.f32 %v356_v9 }
 0x103   :  { %444 = vrcp.f32 %v357_v16 }
 0x10c   :  { %v443_v32 = vpop.eup %442 }
 0x10d   :  { %v445_v36 = vpop.eup %444  ;;  %v360_v37 = vmul.f32 %v443_v32, %v354_v31 }
 0x10e   :  { %v361_v39 = vmul.f32 %v445_v36, %v355_v35 }
 0x10f   :  { %v362_v40 = vmax.f32 %v360_v37, 0.0 }
 0x110   :  { %v363_v41 = vmax.f32 %v361_v39, 0.0 }
 0x111   :  { %v364_v42 = vmin.f32 %v362_v40, 1.0 }
 0x112   :  { %v365_v10 = vmin.f32 %v363_v41, 1.0 }
 0x113   :  { %366 = vst [vmem:[#allocation7] sm:$0xff] %v364_v42 }
 0x114   :  { %367 = vst [vmem:[#allocation7 + $0x8] sm:$0xff] %v365_v10 }
 0x115   :  { %501 = shalt.err (!%p498_p6)
}
 0x116   :  { %s502_s10 = scalar_lea.hbm %s655_s2, 256 }
 0x117   :  { %p503_p7 = scmp.ne.s32.totalorder %s655_s2, %s502_s10  ;;  %p506_p8 = scmp.lt.u32.totalorder %s502_s10, %s655_s2 }
 0x119   :  { %p508_p9 = pnand %p506_p8, %p503_p7 }
 0x11b   :  { %511 = shalt.err (!%p508_p9)
}
 0x11c   :  { %377 = dma.vmem_to_hbm [thread:$0]  %s375_s6, 256, %s655_s2, [#allocation4]  }
 0x11d   :  { %516 = dma.done.wait [#allocation4], 256  }
 0x11e   :  { %517 = vsyncadd [#allocation4], 4294967040 }
 0x11f   :  { %381 = vsyncpa [#allocation3], 1 }
 0x120   :  { %382 = vsyncpa [#allocation6], 1 }
 0x121   :  { %383 = vsyncpa [#allocation4], 1 }

</bundles_post_ra>
